<compile_context>
chip_gen: v7x
topology: tpu7x:2x2x1
jax: 0.10.0
libtpu: 0.0.40
codegen_flags: <defaults>
</compile_context>

<pallas_src>
import functools

import jax
import jax.numpy as jnp
from jax import lax
from jax.experimental import pallas as pl
from jax.experimental.pallas import tpu as pltpu

LANE = 128
SUBLANE = 8
TB_MAX = 1024  # max batch-tile rows; footprint ~5 MiB, inside v5e's 16 MiB scoped VMEM


def _round_up(n, m):
    return ((n + m - 1) // m) * m


def _cdiv(a, b):
    return -(-a // b)


def actor_kernel(x_ref, w1_ref, b1_ref, w2_ref, b2_ref, wmu_t_ref, bmu_ref,
                 scale_ref, bias_ref, o_ref):
    # fc1 + relu : bf16 operands into the MXU, f32 accumulation / elementwise.
    h1 = jnp.dot(x_ref[...], w1_ref[...],
                 preferred_element_type=jnp.float32) + b1_ref[...]
    h1 = jnp.maximum(h1, 0.0)

    # fc2 + relu
    h2 = jnp.dot(h1.astype(jnp.bfloat16), w2_ref[...],
                 preferred_element_type=jnp.float32) + b2_ref[...]
    h2 = jnp.maximum(h2, 0.0)

    # fc_mu computed transposed: wmu_T [act8, H] contracted with h2 [tb, H]
    # over H -> [act8, tb].  Output tile is (8, tb): batch on lanes, so stores
    # are lane-dense and only act8 sublanes of f32 are ever written to HBM.
    mu = lax.dot_general(
        wmu_t_ref[...], h2.astype(jnp.bfloat16),
        dimension_numbers=(((1,), (1,)), ((), ())),
        preferred_element_type=jnp.float32) + bmu_ref[...]
    mu = jnp.tanh(mu)  # EUP; 16x fewer tanh than the old (tb, 128) layout.

    # Post-tanh affine; scale/bias are [act8, 1] columns broadcast over lanes.
    o_ref[...] = mu * scale_ref[...] + bias_ref[...]


def _batch_plan(B):
    """Pick (tile_rows, padded_rows, grid_steps) for the batch axis."""
    b_min = _round_up(B, SUBLANE)
    if b_min <= TB_MAX:
        return b_min, b_min, 1  # single tile (per-env-step inference path)

    def plan(n):
        tb = _round_up(_cdiv(B, n), LANE)  # lane-multiple tiles => (8,128)-legal blocks
        n = _cdiv(B, tb)
        return tb, tb * n, n

    p0 = plan(_cdiv(B, TB_MAX))
    cands = [p0]
    if p0[2] % 2:  # v7x: even grids split evenly across the two TensorCores
        cands.append(plan(p0[2] + 1))
    return min(cands, key=lambda p: p[1] * (1.125 if p[2] % 2 else 1.0))


@functools.partial(jax.jit, static_argnums=(2,))
def actor_forward(x, params, act_dim):
    (w1, b1, w2, b2, wmu_t, bmu, action_scale, action_bias) = params
    B, obs_dim = x.shape
    hidden = w1.shape[1]
    act8 = wmu_t.shape[0]

    x = x.astype(jnp.bfloat16)  # halve input DMA; kernel consumes bf16 directly
    tb, b_pad, n_steps = _batch_plan(B)
    if b_pad != B:
        x = jnp.pad(x, ((0, b_pad - B), (0, 0)))

    def resident(shape):  # constant block index -> stays in VMEM across steps
        return pl.BlockSpec(shape, lambda i: (0, 0))

    flops = 2 * b_pad * (obs_dim * hidden + hidden * hidden + hidden * act8)
    bytes_accessed = (x.size * 2
                      + (w1.size + w2.size + wmu_t.size) * 2
                      + (b1.size + b2.size + bmu.size
                         + action_scale.size + action_bias.size) * 4
                      + act8 * b_pad * 4)

    out = pl.pallas_call(
        actor_kernel,
        out_shape=jax.ShapeDtypeStruct((act8, b_pad), jnp.float32),
        grid=(n_steps,),
        in_specs=[
            pl.BlockSpec((tb, obs_dim), lambda i: (i, 0)),  # x: tiled over batch
            resident((obs_dim, hidden)),                    # w1 (bf16, resident)
            resident((1, hidden)),                          # b1
            resident((hidden, hidden)),                     # w2 (bf16, resident)
            resident((1, hidden)),                          # b2
            resident((act8, hidden)),                       # wmu^T (bf16, resident)
            resident((act8, 1)),                            # bmu column
            resident((act8, 1)),                            # action_scale column
            resident((act8, 1)),                            # action_bias column
        ],
        out_specs=pl.BlockSpec((act8, tb), lambda i: (0, i)),
        compiler_params=pltpu.CompilerParams(
            dimension_semantics=("parallel",)),
        cost_estimate=pl.CostEstimate(
            flops=flops,
            transcendentals=b_pad * act8,
            bytes_accessed=bytes_accessed),
    )(x, w1, b1, w2, b2, wmu_t, bmu, action_scale, action_bias)

    # TODO(synk): cross-call weight prefetch (P10) for the frozen-weight
    # per-env-step (B~8) path to hide the residual ~150 KB weight DMA.
    # Slice now touches only act_dim x B floats (vs a full [b_pad,128] pass).
    return out[:act_dim, :B].T


def init_actor_params(key, obs_dim, act_dim, hidden=256,
                      action_low=-1.0, action_high=1.0):
    """PyTorch-style init U(-1/sqrt(fan_in), 1/sqrt(fan_in)).
    fc1/fc2 stored [in, out]; fc_mu stored transposed & sublane-padded
    ([act8, hidden]); MXU-operand weights in bf16, biases/affine in f32."""
    ks = jax.random.split(key, 6)
    act8 = _round_up(act_dim, SUBLANE)

    def linear(kw, kb, fan_in, fan_out):
        bound = 1.0 / (fan_in ** 0.5)
        w = jax.random.uniform(kw, (fan_in, fan_out), jnp.float32, -bound, bound)
        b = jax.random.uniform(kb, (1, fan_out), jnp.float32, -bound, bound)
        return w, b

    w1, b1 = linear(ks[0], ks[1], obs_dim, hidden)
    w2, b2 = linear(ks[2], ks[3], hidden, hidden)
    wmu, bmu_row = linear(ks[4], ks[5], hidden, act_dim)

    wmu_t = jnp.zeros((act8, hidden), jnp.float32).at[:act_dim].set(wmu.T)
    bmu = jnp.zeros((act8, 1), jnp.float32).at[:act_dim, 0].set(bmu_row[0])

    # TODO(synk): optional fp8 weights on v7x (keep bf16 on v5e/v6e).
    w1 = w1.astype(jnp.bfloat16)
    w2 = w2.astype(jnp.bfloat16)
    wmu_t = wmu_t.astype(jnp.bfloat16)

    scale_val = (action_high - action_low) / 2.0
    bias_val = (action_high + action_low) / 2.0
    action_scale = jnp.zeros((act8, 1), jnp.float32).at[:act_dim].set(scale_val)
    action_bias = jnp.zeros((act8, 1), jnp.float32).at[:act_dim].set(bias_val)

    return (w1, b1, w2, b2, wmu_t, bmu, action_scale, action_bias)


def actor_reference(x, params, act_dim):
    """Pure-JAX reference mirroring the kernel's bf16-operand / f32-accum math."""
    (w1, b1, w2, b2, wmu_t, bmu, action_scale, action_bias) = params
    h1 = jax.nn.relu(jnp.dot(x.astype(jnp.bfloat16), w1,
                             preferred_element_type=jnp.float32) + b1)
    h2 = jax.nn.relu(jnp.dot(h1.astype(jnp.bfloat16), w2,
                             preferred_element_type=jnp.float32) + b2)
    mu = jnp.tanh(jnp.dot(h2.astype(jnp.bfloat16), wmu_t.T,
                          preferred_element_type=jnp.float32) + bmu[:, 0])
    out = mu * action_scale[:, 0] + action_bias[:, 0]
    return out[:, :act_dim]


if __name__ == "__main__":
    # MuJoCo-like shapes: obs_dim=17 (HalfCheetah), act_dim=6, hidden=256.
    B, OBS_DIM, ACT_DIM = 8, 17, 6

    key = jax.random.PRNGKey(0)
    kx, kp = jax.random.split(key)

    x = jax.random.normal(kx, (B, OBS_DIM), jnp.float32)
    params = init_actor_params(kp, OBS_DIM, ACT_DIM, hidden=256,
                               action_low=-1.0, action_high=1.0)

    # Small per-step batch (single grid step).
    out = jax.block_until_ready(actor_forward(x, params, ACT_DIM))
    ref = actor_reference(x, params, ACT_DIM)
    assert out.shape == (B, ACT_DIM)
    assert jnp.allclose(out, ref, atol=1e-3, rtol=1e-3), "mismatch vs reference (B=8)"

    # Larger, ragged batch exercising the multi-step grid + padding path.
    BL = 1037
    xl = jax.random.normal(jax.random.PRNGKey(1), (BL, OBS_DIM), jnp.float32)
    outl = jax.block_until_ready(actor_forward(xl, params, ACT_DIM))
    refl = actor_reference(xl, params, ACT_DIM)
    assert outl.shape == (BL, ACT_DIM)
    assert jnp.allclose(outl, refl, atol=1e-3, rtol=1e-3), "mismatch vs reference (B=1037)"

    print("KERNEL_OK")
</pallas_src>

<mosaic_0001>
module attributes {stable_mosaic.version = 11 : i64} {
  func.func @actor_kernel(%arg0: i32, %arg1: memref<8x17xbf16, #tpu.memory_space<vmem>>, %arg2: memref<17x256xbf16, #tpu.memory_space<vmem>>, %arg3: memref<1x256xf32, #tpu.memory_space<vmem>>, %arg4: memref<256x256xbf16, #tpu.memory_space<vmem>>, %arg5: memref<1x256xf32, #tpu.memory_space<vmem>>, %arg6: memref<8x256xbf16, #tpu.memory_space<vmem>>, %arg7: memref<8x1xf32, #tpu.memory_space<vmem>>, %arg8: memref<8x1xf32, #tpu.memory_space<vmem>>, %arg9: memref<8x1xf32, #tpu.memory_space<vmem>>, %arg10: memref<8x8xf32, #tpu.memory_space<vmem>>) attributes {dimension_semantics = [#tpu.dimension_semantics<parallel>], iteration_bounds = array<i64: 1>, scalar_prefetch = 0 : i64, scratch_operands = 0 : i64, tpu.core_type = #tpu.core_type<tc>, window_params = [{transform_indices = @transform_0, window_bounds = array<i64: 8, 17>}, {pipeline_mode = #tpu.pipeline_mode<synchronous>, transform_indices = @transform_1, window_bounds = array<i64: 17, 256>}, {pipeline_mode = #tpu.pipeline_mode<synchronous>, transform_indices = @transform_2, window_bounds = array<i64: 1, 256>}, {pipeline_mode = #tpu.pipeline_mode<synchronous>, transform_indices = @transform_3, window_bounds = array<i64: 256, 256>}, {pipeline_mode = #tpu.pipeline_mode<synchronous>, transform_indices = @transform_4, window_bounds = array<i64: 1, 256>}, {pipeline_mode = #tpu.pipeline_mode<synchronous>, transform_indices = @transform_5, window_bounds = array<i64: 8, 256>}, {pipeline_mode = #tpu.pipeline_mode<synchronous>, transform_indices = @transform_6, window_bounds = array<i64: 8, 1>}, {pipeline_mode = #tpu.pipeline_mode<synchronous>, transform_indices = @transform_7, window_bounds = array<i64: 8, 1>}, {pipeline_mode = #tpu.pipeline_mode<synchronous>, transform_indices = @transform_8, window_bounds = array<i64: 8, 1>}, {transform_indices = @transform_9, window_bounds = array<i64: 8, 8>}]} {
    %c0 = arith.constant 0 : index
    %c0_0 = arith.constant 0 : index
    %0 = vector.load %arg1[%c0, %c0_0] : memref<8x17xbf16, #tpu.memory_space<vmem>>, vector<8x17xbf16>
    %c0_1 = arith.constant 0 : index
    %c0_2 = arith.constant 0 : index
    %1 = vector.load %arg2[%c0_1, %c0_2] : memref<17x256xbf16, #tpu.memory_space<vmem>>, vector<17x256xbf16>
    %cst = arith.constant dense<0.000000e+00> : vector<8x256xf32>
    %2 = tpu.matmul %0, %1, %cst {dimension_numbers = #tpu.dot_dimension_numbers<[1], [0], [0], [1], [0, 0, 1, 1], [], []>} : vector<8x17xbf16>, vector<17x256xbf16>, vector<8x256xf32> -> vector<8x256xf32>
    %c0_3 = arith.constant 0 : index
    %c0_4 = arith.constant 0 : index
    %3 = vector.load %arg3[%c0_3, %c0_4] : memref<1x256xf32, #tpu.memory_space<vmem>>, vector<1x256xf32>
    %4 = vector.broadcast %3 : vector<1x256xf32> to vector<8x256xf32>
    %5 = arith.addf %2, %4 : vector<8x256xf32>
    %cst_5 = arith.constant 0.000000e+00 : f32
    %6 = vector.broadcast %cst_5 : f32 to vector<8x256xf32>
    %7 = arith.maximumf %5, %6 : vector<8x256xf32>
    %8 = arith.truncf %7 : vector<8x256xf32> to vector<8x256xbf16>
    %c0_6 = arith.constant 0 : index
    %c0_7 = arith.constant 0 : index
    %9 = vector.load %arg4[%c0_6, %c0_7] : memref<256x256xbf16, #tpu.memory_space<vmem>>, vector<256x256xbf16>
    %cst_8 = arith.constant dense<0.000000e+00> : vector<8x256xf32>
    %10 = tpu.matmul %8, %9, %cst_8 {dimension_numbers = #tpu.dot_dimension_numbers<[1], [0], [0], [1], [0, 0, 1, 1], [], []>} : vector<8x256xbf16>, vector<256x256xbf16>, vector<8x256xf32> -> vector<8x256xf32>
    %c0_9 = arith.constant 0 : index
    %c0_10 = arith.constant 0 : index
    %11 = vector.load %arg5[%c0_9, %c0_10] : memref<1x256xf32, #tpu.memory_space<vmem>>, vector<1x256xf32>
    %12 = vector.broadcast %11 : vector<1x256xf32> to vector<8x256xf32>
    %13 = arith.addf %10, %12 : vector<8x256xf32>
    %cst_11 = arith.constant 0.000000e+00 : f32
    %14 = vector.broadcast %cst_11 : f32 to vector<8x256xf32>
    %15 = arith.maximumf %13, %14 : vector<8x256xf32>
    %c0_12 = arith.constant 0 : index
    %c0_13 = arith.constant 0 : index
    %16 = vector.load %arg6[%c0_12, %c0_13] : memref<8x256xbf16, #tpu.memory_space<vmem>>, vector<8x256xbf16>
    %17 = arith.truncf %15 : vector<8x256xf32> to vector<8x256xbf16>
    %cst_14 = arith.constant dense<0.000000e+00> : vector<8x8xf32>
    %18 = tpu.matmul %16, %17, %cst_14 {dimension_numbers = #tpu.dot_dimension_numbers<[1], [1], [0], [0], [0, 0, 1, 0], [], []>} : vector<8x256xbf16>, vector<8x256xbf16>, vector<8x8xf32> -> vector<8x8xf32>
    %c0_15 = arith.constant 0 : index
    %c0_16 = arith.constant 0 : index
    %19 = vector.load %arg7[%c0_15, %c0_16] : memref<8x1xf32, #tpu.memory_space<vmem>>, vector<8x1xf32>
    %20 = vector.broadcast %19 : vector<8x1xf32> to vector<8x8xf32>
    %21 = arith.addf %18, %20 : vector<8x8xf32>
    %22 = math.tanh %21 : vector<8x8xf32>
    %c0_17 = arith.constant 0 : index
    %c0_18 = arith.constant 0 : index
    %23 = vector.load %arg8[%c0_17, %c0_18] : memref<8x1xf32, #tpu.memory_space<vmem>>, vector<8x1xf32>
    %24 = vector.broadcast %23 : vector<8x1xf32> to vector<8x8xf32>
    %25 = arith.mulf %22, %24 : vector<8x8xf32>
    %c0_19 = arith.constant 0 : index
    %c0_20 = arith.constant 0 : index
    %26 = vector.load %arg9[%c0_19, %c0_20] : memref<8x1xf32, #tpu.memory_space<vmem>>, vector<8x1xf32>
    %27 = vector.broadcast %26 : vector<8x1xf32> to vector<8x8xf32>
    %28 = arith.addf %25, %27 : vector<8x8xf32>
    %c0_21 = arith.constant 0 : index
    %c0_22 = arith.constant 0 : index
    %29 = vector.load %arg10[%c0_21, %c0_22] : memref<8x8xf32, #tpu.memory_space<vmem>>, vector<8x8xf32>
    tpu.vector_store %arg10[%c0_21, %c0_22], %28 {strides = array<i32>} : memref<8x8xf32, #tpu.memory_space<vmem>>, vector<8x8xf32>,
    return
  }
  func.func @transform_0(%arg0: i32) -> (i32, i32) {
    %c0_i32 = arith.constant 0 : i32
    %c0_i32_0 = arith.constant 0 : i32
    return %arg0, %c0_i32 : i32, i32
  }
  func.func @transform_1(%arg0: i32) -> (i32, i32) {
    %c0_i32 = arith.constant 0 : i32
    %c0_i32_0 = arith.constant 0 : i32
    %c0_i32_1 = arith.constant 0 : i32
    return %c0_i32, %c0_i32_0 : i32, i32
  }
  func.func @transform_2(%arg0: i32) -> (i32, i32) {
    %c0_i32 = arith.constant 0 : i32
    %c0_i32_0 = arith.constant 0 : i32
    %c0_i32_1 = arith.constant 0 : i32
    return %c0_i32, %c0_i32_0 : i32, i32
  }
  func.func @transform_3(%arg0: i32) -> (i32, i32) {
    %c0_i32 = arith.constant 0 : i32
    %c0_i32_0 = arith.constant 0 : i32
    %c0_i32_1 = arith.constant 0 : i32
    return %c0_i32, %c0_i32_0 : i32, i32
  }
  func.func @transform_4(%arg0: i32) -> (i32, i32) {
    %c0_i32 = arith.constant 0 : i32
    %c0_i32_0 = arith.constant 0 : i32
    %c0_i32_1 = arith.constant 0 : i32
    return %c0_i32, %c0_i32_0 : i32, i32
  }
  func.func @transform_5(%arg0: i32) -> (i32, i32) {
    %c0_i32 = arith.constant 0 : i32
    %c0_i32_0 = arith.constant 0 : i32
    %c0_i32_1 = arith.constant 0 : i32
    return %c0_i32, %c0_i32_0 : i32, i32
  }
  func.func @transform_6(%arg0: i32) -> (i32, i32) {
    %c0_i32 = arith.constant 0 : i32
    %c0_i32_0 = arith.constant 0 : i32
    %c0_i32_1 = arith.constant 0 : i32
    return %c0_i32, %c0_i32_0 : i32, i32
  }
  func.func @transform_7(%arg0: i32) -> (i32, i32) {
    %c0_i32 = arith.constant 0 : i32
    %c0_i32_0 = arith.constant 0 : i32
    %c0_i32_1 = arith.constant 0 : i32
    return %c0_i32, %c0_i32_0 : i32, i32
  }
  func.func @transform_8(%arg0: i32) -> (i32, i32) {
    %c0_i32 = arith.constant 0 : i32
    %c0_i32_0 = arith.constant 0 : i32
    %c0_i32_1 = arith.constant 0 : i32
    return %c0_i32, %c0_i32_0 : i32, i32
  }
  func.func @transform_9(%arg0: i32) -> (i32, i32) {
    %c0_i32 = arith.constant 0 : i32
    %c0_i32_0 = arith.constant 0 : i32
    return %c0_i32, %arg0 : i32, i32
  }
}

</mosaic_0001>

<bundles_post_ra>
// kernel: actor_forward.1
= control target key start
LH: loop header
LB: loop body
LE: loop exit
PB: predicated region body
PF: predicated region fallthrough
CT: control target
= control target key end

     0   :  { %14 = vsyncpa [#allocation3], 0  ;;  %s587_s30 = smov [#allocation2]   ;;  %s686_s0 = inlined_call_operand.vmem [shape: bf16[8,17], index: 0, kind: input, shape index: {}]   ;;  %s687_s1 = inlined_call_operand.vmem [shape: bf16[17,256], index: 1, kind: input, shape index: {}]   ;;  %s688_s2 = inlined_call_operand.vmem [shape: f32[1,256], index: 2, kind: input, shape index: {}]   ;;  %s689_s3 = inlined_call_operand.hbm [shape: bf16[256,256], index: 3, kind: input, shape index: {}]   ;;  %s690_s4 = inlined_call_operand.vmem [shape: f32[1,256], index: 4, kind: input, shape index: {}]   ;;  %s691_s5 = inlined_call_operand.vmem [shape: bf16[8,256], index: 5, kind: input, shape index: {}]   ;;  %s692_s6 = inlined_call_operand.vmem [shape: f32[8,1], index: 6, kind: input, shape index: {}]   ;;  %s693_s7 = inlined_call_operand.vmem [shape: f32[8,1], index: 7, kind: input, shape index: {}]   ;;  %s694_s8 = inlined_call_operand.vmem [shape: f32[8,1], index: 8, kind: input, shape index: {}]   ;;  %s695_s9 = inlined_call_operand.vmem [shape: f32[8,8], index: 9, kind: output, shape index: {}]  }
   0x1   :  { %s26_s10 = sshll.u32 %s587_s30, 4  ;;  %s563_s13 = scalar_lea.hbm %s689_s3, 4096  ;;  %s27_s10 = int_to_ptr.vmem [resolvable:$true] %s26_s10 }
   0x2   :  { %p564_p0 = scmp.ne.s32.totalorder %s689_s3, %s563_s13  ;;  %p567_p1 = scmp.lt.u32.totalorder %s563_s13, %s689_s3 }
   0x4   :  { %p569_p2 = pnand %p567_p1, %p564_p0 }
   0x6   :  { %572 = shalt.err (!%p569_p2)
}
   0x7   :  { %s573_s18 = scalar_lea.vmem %s27_s10, 4096  ;;  %p578_p4 = scmp.lt.s32.totalorder %s27_s10, %s27_s10 }
   0x8   :  { %p574_p3 = scmp.ne.s32.totalorder %s27_s10, %s573_s18  ;;  %p579_p5 = scmp.lt.s32.totalorder %s573_s18, %s573_s18 }
   0xa   :  { %p580_p6 = por %p579_p5, %p578_p4 }
   0xc   :  { %p581_p7 = pnand %p580_p6, %p574_p3 }
   0xe   :  { %584 = shalt.err (!%p581_p7)
}
   0xf   :  { %s588_s19 = smov 128   ;;  %s589_s20 = smov 8  }
  0x10   :  { %32 = dma.hbm_to_vmem [thread:$0]  %s689_s3, 4096, %s27_s10, [#allocation3], %s588_s19, %s588_s19, %s589_s20  }
  0x11   :  { %585 = dma.done.wait [#allocation3], 4096  }
  0x12   :  { %586 = vsyncadd [#allocation3], 4294963200  ;;  %v590_v0 = vmov 0   ;;  %vm82_vm0 = vcmask 1040384   ;;  %v506_v1 = vld [vmem:[%s687_s1 + $0x4] ss:$8 sps:$4 sm:$0xff]   ;;  %v53_v42 = vlaneseq }
  0x13   :  { %123 = vmatprep.mubr.bf16.mxu0 %v590_v0  ;;  %504 = vset.pattern.permute.xlu0 %v590_v0  ;;  %v508_v2 = vld [vmem:[%s687_s1] ss:$8 sps:$4 sm:$0xff]   ;;  %v50_v3 = vld [vmem:[%s687_s1 + $0x10] sm:$0x11]  ;;  %v84_v4 = vsel %vm82_vm0, 65535, %v590_v0  ;;  %vm78_vm1 = vcmask 138240  }
  0x14   :  { %505 = vset.pattern.permute.xlu1 %v590_v0  ;;  %91 = vmatprep.subr.bf16.mxu0 %v506_v1  ;;  %v464_v5 = vcombine.high %v50_v3, %v50_v3  ;;  %v463_v6 = vcombine.low %v50_v3, %v50_v3  ;;  %v511_v7 = vld [vmem:[#allocation2 + $0x4] ss:$8 sps:$4 sm:$0xff]   ;;  %v513_v8 = vld [vmem:[#allocation2] ss:$8 sps:$4 sm:$0xff]   ;;  %v514_v11 = vld [vmem:[#allocation2 + $0x14] ss:$8 sps:$4 sm:$0xff]  }
  0x15   :  { %92 = vmatpush1.bf16.msra.mxu0 %v508_v2  ;;  %340 = vmatprep.subr.bf16.mxu1 %v511_v7  ;;  %v516_v12 = vld [vmem:[#allocation2 + $0x10] ss:$8 sps:$4 sm:$0xff]   ;;  %v517_v13 = vld [vmem:[#allocation2 + $0x24] ss:$8 sps:$4 sm:$0xff]   ;;  %v47_v14 = vld [vmem:[%s686_s0] sm:$0xf] }
  0x16   :  { %v89_v9 = vand.u32 %v464_v5, %v84_v4  ;;  %v86_v10 = vand.u32 %v463_v6, %v84_v4  ;;  %341 = vmatpush1.bf16.msra.mxu1 %v513_v8  ;;  %v519_v15 = vld [vmem:[#allocation2 + $0x20] ss:$8 sps:$4 sm:$0xff]   ;;  %v520_v16 = vld [vmem:[#allocation2 + $0x34] ss:$8 sps:$4 sm:$0xff]   ;;  %v522_v17 = vld [vmem:[#allocation2 + $0x30] ss:$8 sps:$4 sm:$0xff]  }
  0x17   :  { %342 = vmatprep.subr.bf16.mxu1 %v514_v11  ;;  %v523_v18 = vld [vmem:[#allocation2 + $0x44] ss:$8 sps:$4 sm:$0xff]   ;;  %v525_v19 = vld [vmem:[#allocation2 + $0x40] ss:$8 sps:$4 sm:$0xff]   ;;  %v526_v20 = vld [vmem:[#allocation2 + $0x54] ss:$8 sps:$4 sm:$0xff]  }
  0x18   :  { %93 = vmatprep.subr.bf16.mxu0 %v89_v9  ;;  %v528_v21 = vld [vmem:[#allocation2 + $0x50] ss:$8 sps:$4 sm:$0xff]   ;;  %v529_v22 = vld [vmem:[#allocation2 + $0x64] ss:$8 sps:$4 sm:$0xff]   ;;  %v531_v23 = vld [vmem:[#allocation2 + $0x60] ss:$8 sps:$4 sm:$0xff]  }
  0x19   :  { %94 = vmatpush1.bf16.msra.mxu0 %v86_v10  ;;  %v532_v24 = vld [vmem:[#allocation2 + $0x74] ss:$8 sps:$4 sm:$0xff]   ;;  %v534_v25 = vld [vmem:[#allocation2 + $0x70] ss:$8 sps:$4 sm:$0xff]   ;;  %v535_v26 = vld [vmem:[#allocation2 + $0x84] ss:$8 sps:$4 sm:$0xff]  }
  0x1a   :  { %343 = vmatpush1.bf16.msra.mxu1 %v516_v12  ;;  %v537_v27 = vld [vmem:[#allocation2 + $0x80] ss:$8 sps:$4 sm:$0xff]   ;;  %v538_v28 = vld [vmem:[#allocation2 + $0x94] ss:$8 sps:$4 sm:$0xff]   ;;  %v540_v29 = vld [vmem:[#allocation2 + $0x90] ss:$8 sps:$4 sm:$0xff]  }
  0x1b   :  { %344 = vmatprep.subr.bf16.mxu1 %v517_v13  ;;  %v541_v30 = vld [vmem:[#allocation2 + $0xa4] ss:$8 sps:$4 sm:$0xff]   ;;  %v543_v31 = vld [vmem:[#allocation2 + $0xa0] ss:$8 sps:$4 sm:$0xff]   ;;  %v544_v32 = vld [vmem:[#allocation2 + $0xb4] ss:$8 sps:$4 sm:$0xff]  }
  0x1c   :  { %465 = vmatmul.mubr.msk.bf16.vlgmr.msra.gmra.mrb[0].mxu0 %vm78_vm1, %v47_v14  ;;  %v546_v33 = vld [vmem:[#allocation2 + $0xb0] ss:$8 sps:$4 sm:$0xff]   ;;  %v547_v34 = vld [vmem:[#allocation2 + $0xc4] ss:$8 sps:$4 sm:$0xff]   ;;  %v549_v35 = vld [vmem:[#allocation2 + $0xc0] ss:$8 sps:$4 sm:$0xff]  }
  0x1d   :  { %v550_v36 = vld [vmem:[#allocation2 + $0xd4] ss:$8 sps:$4 sm:$0xff]   ;;  %v552_v37 = vld [vmem:[#allocation2 + $0xd0] ss:$8 sps:$4 sm:$0xff]   ;;  %v553_v38 = vld [vmem:[#allocation2 + $0xe4] ss:$8 sps:$4 sm:$0xff]  }
  0x1e   :  { %345 = vmatpush1.bf16.msra.mxu1 %v519_v15  ;;  %v555_v39 = vld [vmem:[#allocation2 + $0xe0] ss:$8 sps:$4 sm:$0xff]   ;;  %v556_v40 = vld [vmem:[#allocation2 + $0xf4] ss:$8 sps:$4 sm:$0xff]   ;;  %v558_v41 = vld [vmem:[#allocation2 + $0xf0] ss:$8 sps:$4 sm:$0xff]  }
  0x1f   :  { %346 = vmatprep.subr.bf16.mxu1 %v520_v16  ;;  %v54_v43 = vshrl.u32 %v53_v42, 7  ;;  %v51_v45 = vld [vmem:[%s688_s2] sm:$0x3]  ;;  %vm454_vm2 = vcmask 64512  }
  0x20   :  { %v383_v59 = vld [vmem:[%s691_s5] sm:$0xff] }
  0x21   :  { %v55_v44 = vsub.s32 0, %v54_v43  ;;  %v59_v46 = vsub.s32 1, %v54_v43  ;;  %v499_v60 = vcombine.high %v383_v59, %v383_v59  ;;  %v386_v61 = vld [vmem:[%s692_s6] sm:$0xff]  ;;  %v498_v13 = vcombine.low %v383_v59, %v383_v59 }
  0x22   :  { %347 = vmatpush1.bf16.msra.mxu1 %v522_v17  ;;  %v447_v62 = vld [vmem:[%s694_s8] sm:$0xff]  ;;  %389 = vperm.xlu0 %504, %v386_v61  }
  0x23   :  { %348 = vmatprep.subr.bf16.mxu1 %v523_v18  ;;  %v56_v47 = vrot.slane %v51_v45, %v55_v44  ;;  %v60_v48 = vrot.slane %v51_v45, %v59_v46  ;;  %431 = vmatprep.mubr.bf16.mxu0 %v499_v60  ;;  %v440_v63 = vld [vmem:[%s693_s7] sm:$0xff] }
  0x24   :  { %450 = vperm.xlu1 %505, %v447_v62   ;;  %v168_v0 = vld [vmem:[%s690_s4] sm:$0x3] }
  0x25   :  { %v173_v1 = vrot.slane %v168_v0, %v55_v44  ;;  %v177_v2 = vrot.slane %v168_v0, %v59_v46 }
  0x26   :  { %349 = vmatpush1.bf16.msra.mxu1 %v525_v19  ;;  %443 = vperm.xlu0 %504, %v440_v63  }
  0x27   :  { %350 = vmatprep.subr.bf16.mxu1 %v526_v20 }
  0x2a   :  { %351 = vmatpush1.bf16.msra.mxu1 %v528_v21 }
  0x2b   :  { %352 = vmatprep.subr.bf16.mxu1 %v529_v22 }
  0x2e   :  { %353 = vmatpush1.bf16.msra.mxu1 %v531_v23 }
  0x2f   :  { %354 = vmatprep.subr.bf16.mxu1 %v532_v24 }
  0x32   :  { %355 = vmatpush1.bf16.msra.mxu1 %v534_v25 }
  0x33   :  { %356 = vmatprep.subr.bf16.mxu1 %v535_v26 }
  0x36   :  { %357 = vmatpush1.bf16.msra.mxu1 %v537_v27 }
  0x37   :  { %358 = vmatprep.subr.bf16.mxu1 %v538_v28 }
  0x3a   :  { %359 = vmatpush1.bf16.msra.mxu1 %v540_v29 }
  0x3b   :  { %360 = vmatprep.subr.bf16.mxu1 %v541_v30 }
  0x3e   :  { %361 = vmatpush1.bf16.msra.mxu1 %v543_v31 }
  0x3f   :  { %362 = vmatprep.subr.bf16.mxu1 %v544_v32 }
  0x42   :  { %363 = vmatpush1.bf16.msra.mxu1 %v546_v33 }
  0x43   :  { %364 = vmatprep.subr.bf16.mxu1 %v547_v34 }
  0x46   :  { %365 = vmatpush1.bf16.msra.mxu1 %v549_v35 }
  0x47   :  { %366 = vmatprep.subr.bf16.mxu1 %v550_v36 }
  0x4a   :  { %367 = vmatpush1.bf16.msra.mxu1 %v552_v37 }
  0x4b   :  { %368 = vmatprep.subr.bf16.mxu1 %v553_v38 }
  0x4e   :  { %369 = vmatpush1.bf16.msra.mxu1 %v555_v39 }
  0x4f   :  { %370 = vmatprep.subr.bf16.mxu1 %v556_v40 }
  0x52   :  { %371 = vmatpush1.bf16.msra.mxu1 %v558_v41 }
  0xa1   :  { %v390_v14 = vpop.permute.xlu0 %389 }
  0xa3   :  { %v451_v22 = vpop.permute.xlu1 %450 }
  0xa5   :  { %v444_v21 = vpop.permute.xlu0 %443 }
  0xef   :  { %v125_v49 = vpop.f32.mrb[0].mxu0 }
  0xf0   :  { %v126_v50 = vadd.f32 %v125_v49, %v56_v47  ;;  %v127_v51 = vpop.f32.mrb[1].mxu0 }
  0xf1   :  { %v128_v52 = vadd.f32 %v127_v51, %v60_v48  ;;  %v129_v53 = vpop.f32.mrb[2].mxu0 }
  0xf2   :  { %v132_v54 = vmax.f32 %v126_v50, 0.0  ;;  %v130_v55 = vpop.f32.mrb[3].mxu0 }
  0xf3   :  { %v133_v56 = vmax.f32 %v128_v52, 0.0 }
  0xf4   :  { %v134_v58 = vpack.c.bf16 %v132_v54, %v132_v54 }
  0xf5   :  { %v135_v57 = vpack.c.bf16 %v133_v56, %v133_v56 }
  0xf7   :  { %372 = vmatprep.mubr.bf16.mxu1 %v135_v57 }
  0xf8   :  { %373 = vmatmul.mubr.bf16.vlgmr.msra.gmra.mrb[0].mxu1 %v134_v58 }
 0x1cb   :  { %v374_v3 = vpop.f32.mrb[0].mxu1 }
 0x1cc   :  { %v375_v4 = vadd.f32 %v374_v3, %v173_v1  ;;  %v376_v5 = vpop.f32.mrb[1].mxu1 }
 0x1cd   :  { %v377_v6 = vadd.f32 %v376_v5, %v177_v2  ;;  %v378_v7 = vpop.f32.mrb[2].mxu1 }
 0x1ce   :  { %v381_v8 = vmax.f32 %v375_v4, 0.0  ;;  %v379_v9 = vpop.f32.mrb[3].mxu1 }
 0x1cf   :  { %v382_v10 = vmax.f32 %v377_v6, 0.0 }
 0x1d0   :  { %v384_v12 = vpack.c.bf16 %v381_v8, %v381_v8 }
 0x1d1   :  { %v385_v11 = vpack.c.bf16 %v382_v10, %v382_v10 }
 0x1d3   :  { %399 = vmatprep.subr.bf16.mxu0 %v385_v11 }
 0x1d4   :  { %400 = vmatpush1.bf16.xpose.msra.mxu0 %v384_v12 }
 0x1db   :  { %432 = vmatmul.mubr.bf16.vlgmr.msra.gmra.mrb[4].mxu0 %v498_v13 }
 0x2ae   :  { %v433_v15 = vpop.f32.mrb[4].mxu0 }
 0x2af   :  { %v434_v16 = vadd.f32 %v433_v15, %v390_v14  ;;  %v435_v17 = vpop.f32.mrb[5].mxu0 }
 0x2b0   :  { %v436_v18 = vpop.f32.mrb[6].mxu0 }
 0x2b1   :  { %561 = vtanh.f32 %v434_v16  ;;  %v437_v19 = vpop.f32.mrb[7].mxu0 }
 0x2bb   :  { %v562_v20 = vpop.eup %561 }
 0x2bc   :  { %v446_v23 = vmul.f32 %v562_v20, %v444_v21 }
 0x2be   :  { %v453_v24 = vadd.f32 %v451_v22, %v446_v23 }
 0x2c0   :  { %455 = vst.msk [vmem:[%s695_s9] sm:$0xff] %vm454_vm2, %v453_v24 }
 0x2c1   :  { %460 = vsyncpa [#allocation3], 1 }

</bundles_post_ra>
